<compile_context>
chip_gen: v5e
topology: v5e:2x2
jax: 0.10.0
libtpu: 0.0.40
codegen_flags: <defaults>
</compile_context>

<pallas_src>
import functools

import jax
import jax.numpy as jnp
from jax.experimental import pallas as pl
from jax.experimental.pallas import tpu as pltpu


def _bloom_gelu(x):
    # Exact constants of bloom_gelu_forward (tanh approximation).
    return x * 0.5 * (1.0 + jnp.tanh(0.79788456 * x * (1.0 + 0.044715 * x * x)))


# ---------------------------------------------------------------------------
# Kernel
# ---------------------------------------------------------------------------
def bloom_mlp_kernel(x_ref, w1_ref, b1_ref, w2_ref, res_ref, b2_ref,
                     o_ref, acc_ref):
    # x_ref:   [TM, H]  (compute dtype, e.g. bf16)     w1_ref: [H, TF]
    # b1_ref:  [1, TF]                                 w2_ref: [TF, H]
    # res_ref: [TM, H]                                 b2_ref: [1, H]
    # o_ref:   [TM, H]   acc_ref: [TM, H] f32 scratch (persists across f steps)
    f = pl.program_id(1)

    # dense_h_to_4h partial slab: [TM, H] @ [H, TF] -> [TM, TF] (bf16 MXU, f32 acc).
    h4h = jnp.dot(x_ref[...], w1_ref[...], preferred_element_type=jnp.float32)
    h4h = h4h + b1_ref[...].astype(jnp.float32)

    # bloom gelu in f32 (EUP tanh + VPU muls overlap with MXU work).
    g = _bloom_gelu(h4h)

    # dense_4h_to_h partial: [TM, TF] @ [TF, H], accumulated in f32.
    partial = jnp.dot(g.astype(w2_ref.dtype), w2_ref[...],
                      preferred_element_type=jnp.float32)

    # First-write instead of zero-init + unconditional RMW.
    @pl.when(f == 0)
    def _first():
        acc_ref[...] = partial

    @pl.when(f > 0)
    def _accum():
        acc_ref[...] += partial

    @pl.when(f == pl.num_programs(1) - 1)
    def _finalize():
        out = (acc_ref[...]
               + b2_ref[...].astype(jnp.float32)
               + res_ref[...].astype(jnp.float32))
        o_ref[...] = out.astype(o_ref.dtype)


# ---------------------------------------------------------------------------
# One-time parameter prep (parameter-load time, NOT the forward path)
# ---------------------------------------------------------------------------
def prepare_params(w1, b1, w2, b2, param_dtype=jnp.bfloat16):
    """w1: [4H, H], b1: [4H], w2: [H, 4H], b2: [H]  (PyTorch nn.Linear layout).

    Returns kernel-friendly layouts W1^T [H,4H], b1 [1,4H], W2^T [4H,H], b2 [1,H],
    cast once to `param_dtype` (bf16 by default: the MXU is a bf16 engine on
    v5e/v6e/v7x and bf16 halves weight HBM traffic).  Pass param_dtype=None to
    keep the original dtype.
    """
    if param_dtype is not None:
        w1, b1, w2, b2 = (p.astype(param_dtype) for p in (w1, b1, w2, b2))
    h4, h = w1.shape
    return (jnp.transpose(w1), b1.reshape(1, h4),
            jnp.transpose(w2), b2.reshape(1, h))


# ---------------------------------------------------------------------------
# Generation-aware tile / VMEM-budget selection
# ---------------------------------------------------------------------------
def _vmem_capacity_bytes():
    try:
        return int(pltpu.get_tpu_info().vmem_capacity_bytes)
    except Exception:
        return 64 * 1024 * 1024      # conservative (v7x-sized) fallback


def _auto_tiles(M, H, H4, x_bytes, w_bytes, out_bytes):
    """Pick (tm, tf, vmem_limit_bytes) from actual tile math vs physical VMEM."""
    cap = _vmem_capacity_bytes()
    budget = (cap * 3) // 4          # headroom for compiler internals

    def need(tm, tf):
        xro = 2 * tm * H * (2 * x_bytes + out_bytes)              # x + res + out (double-buffered)
        wts = 2 * 2 * H * tf * w_bytes + 2 * (tf + H) * w_bytes   # W1/W2 tiles + biases
        acc = tm * H * 4                                          # f32 accumulator scratch
        slab = 2 * tm * tf * 4                                    # h4h / gelu f32 intermediates
        return xro + wts + acc + slab

    tm_cands = [t for t in (1024, 512, 256, 128, 64, 32, 16, 8)
                if t <= M and M % t == 0] or [M]
    tf_cands = [t for t in (512, 256, 128) if t <= H4 and H4 % t == 0] or [H4]

    # Arithmetic intensity per streamed weight byte ~ tm, so prefer the
    # largest tm that fits, then the largest tf.
    tm, tf = tm_cands[-1], tf_cands[-1]
    chosen = False
    for t_m in tm_cands:
        for t_f in tf_cands:
            if need(t_m, t_f) <= budget:
                tm, tf, chosen = t_m, t_f, True
                break
        if chosen:
            break

    # v7x has 2 TensorCores: keep >= 2 row tiles so the "parallel" axis spans both.
    if M // tm < 2:
        half = tm // 2
        if half >= 8 and M % half == 0:
            tm = half

    vmem_limit = int(min(cap, max(need(tm, tf) + cap // 8, 16 * 1024 * 1024)))
    return tm, tf, vmem_limit


# ---------------------------------------------------------------------------
# Forward
# ---------------------------------------------------------------------------
@functools.partial(jax.jit, static_argnames=("tm", "tf", "compute_dtype"))
def bloom_mlp(hidden_states, residual, w1_t, b1_2d, w2_t, b2_2d,
              *, tm=None, tf=None, compute_dtype=jnp.bfloat16):
    """hidden_states / residual: [B, 1, S, H] (tt-style 4D).
    w1_t: [H, 4H], b1_2d: [1, 4H], w2_t: [4H, H], b2_2d: [1, H]
    (pre-transposed / pre-cast once via prepare_params)."""
    B, one, S, H = hidden_states.shape
    assert one == 1
    M = B * S
    H4 = w1_t.shape[1]
    out_dtype = hidden_states.dtype

    # Feed the MXU in the compute dtype (bf16 by default).
    x2d = hidden_states.reshape(M, H).astype(compute_dtype)
    r2d = residual.reshape(M, H).astype(compute_dtype)

    auto_tm, auto_tf, vmem_limit = _auto_tiles(
        M, H, H4,
        jnp.dtype(compute_dtype).itemsize,
        w1_t.dtype.itemsize,
        jnp.dtype(out_dtype).itemsize)
    tm = auto_tm if tm is None else min(tm, M)
    tf = auto_tf if tf is None else min(tf, H4)
    assert M % tm == 0 and H4 % tf == 0, "tile sizes must divide M and 4H"
    # TODO(synk): pad/mask remainder row tiles instead of requiring M % tm == 0.

    grid = (M // tm, H4 // tf)
    num_row_tiles = grid[0]

    # Advisory cost: W1/W2 are re-streamed from HBM once per row tile.
    bytes_accessed = (
        x2d.size * x2d.dtype.itemsize
        + r2d.size * r2d.dtype.itemsize
        + num_row_tiles * (w1_t.size * w1_t.dtype.itemsize
                           + w2_t.size * w2_t.dtype.itemsize
                           + b1_2d.size * b1_2d.dtype.itemsize
                           + b2_2d.size * b2_2d.dtype.itemsize)
        + M * H * jnp.dtype(out_dtype).itemsize
    )
    cost = pl.CostEstimate(
        flops=4 * M * H * H4,          # two M x H x 4H matmuls
        transcendentals=M * H4,        # one tanh per gelu element
        bytes_accessed=bytes_accessed,
    )

    out2d = pl.pallas_call(
        bloom_mlp_kernel,
        out_shape=jax.ShapeDtypeStruct((M, H), out_dtype),
        grid_spec=pltpu.PrefetchScalarGridSpec(
            num_scalar_prefetch=0,
            grid=grid,
            in_specs=[
                pl.BlockSpec((tm, H), lambda i, f: (i, 0)),   # x rows
                pl.BlockSpec((H, tf), lambda i, f: (0, f)),   # W1^T column tile
                pl.BlockSpec((1, tf), lambda i, f: (0, f)),   # b1 tile
                pl.BlockSpec((tf, H), lambda i, f: (f, 0)),   # W2^T row tile
                pl.BlockSpec((tm, H), lambda i, f: (i, 0)),   # residual rows
                pl.BlockSpec((1, H), lambda i, f: (0, 0)),    # b2
            ],
            out_specs=pl.BlockSpec((tm, H), lambda i, f: (i, 0)),
            scratch_shapes=[pltpu.VMEM((tm, H), jnp.float32)],
        ),
        compiler_params=pltpu.CompilerParams(
            dimension_semantics=("parallel", "arbitrary"),
            vmem_limit_bytes=vmem_limit,
        ),
        cost_estimate=cost,
    )(x2d, w1_t, b1_2d, w2_t, r2d, b2_2d)

    return out2d.reshape(B, 1, S, H)


# ---------------------------------------------------------------------------
# Pure-JAX references
# ---------------------------------------------------------------------------
def _reference_f32(hidden_states, residual, w1, b1, w2, b2):
    """Exact module semantics in f32 (PyTorch nn.Linear-layout weights)."""
    x = hidden_states.astype(jnp.float32)
    h = jnp.einsum("bosh,fh->bosf", x, w1.astype(jnp.float32)) + b1.astype(jnp.float32)
    g = _bloom_gelu(h)
    y = jnp.einsum("bosf,hf->bosh", g, w2.astype(jnp.float32)) + b2.astype(jnp.float32)
    return y + residual.astype(jnp.float32)


def _reference_bf16(hidden_states, residual, w1, b1, w2, b2, cd=jnp.bfloat16):
    """Mimics the kernel's bf16-fed-MXU / f32-accumulate numerics."""
    x = hidden_states.astype(cd)
    h = jnp.einsum("bosh,fh->bosf", x, w1.astype(cd),
                   preferred_element_type=jnp.float32)
    h = h + b1.astype(cd).astype(jnp.float32)
    g = _bloom_gelu(h).astype(cd)
    y = jnp.einsum("bosf,hf->bosh", g, w2.astype(cd),
                   preferred_element_type=jnp.float32)
    y = y + b2.astype(cd).astype(jnp.float32)
    return y + residual.astype(cd).astype(jnp.float32)


if __name__ == "__main__":
    # Small, module-consistent shapes: batch=2, seq=16, hidden=128 (4*hidden=512).
    B, S, H = 2, 16, 128
    H4 = 4 * H

    key = jax.random.PRNGKey(0)
    k_x, k_r, k_w1, k_b1, k_w2, k_b2 = jax.random.split(key, 6)

    hidden_states = jax.random.normal(k_x, (B, 1, S, H), dtype=jnp.float32)
    residual = jax.random.normal(k_r, (B, 1, S, H), dtype=jnp.float32)

    # PyTorch nn.Linear-layout parameters.
    w1 = 0.05 * jax.random.normal(k_w1, (H4, H), dtype=jnp.float32)  # dense_h_to_4h.weight
    b1 = 0.05 * jax.random.normal(k_b1, (H4,), dtype=jnp.float32)    # dense_h_to_4h.bias
    w2 = 0.05 * jax.random.normal(k_w2, (H, H4), dtype=jnp.float32)  # dense_4h_to_h.weight
    b2 = 0.05 * jax.random.normal(k_b2, (H,), dtype=jnp.float32)     # dense_4h_to_h.bias

    # One-time parameter layout + bf16 cast (hoisted out of the forward path).
    w1_t, b1_2d, w2_t, b2_2d = prepare_params(w1, b1, w2, b2)

    ref_f32 = _reference_f32(hidden_states, residual, w1, b1, w2, b2)
    ref_bf16 = _reference_bf16(hidden_states, residual, w1, b1, w2, b2)

    # 1) Auto-tiled path (generation-aware tm/tf/vmem_limit, >=2 row tiles).
    out_auto = jax.block_until_ready(
        bloom_mlp(hidden_states, residual, w1_t, b1_2d, w2_t, b2_2d))
    # 2) Explicit small tiles: exercises the multi-step f32 accumulation over
    #    the 4H axis and a multi-row-tile grid.
    out_small = jax.block_until_ready(
        bloom_mlp(hidden_states, residual, w1_t, b1_2d, w2_t, b2_2d,
                  tm=16, tf=128))

    for out in (out_auto, out_small):
        assert out.shape == (B, 1, S, H)
        # Tight check against a reference with matching bf16-operand numerics.
        assert jnp.allclose(out, ref_bf16, atol=2e-2, rtol=2e-2), \
            "mismatch vs bf16-operand reference"
        # Looser check against exact f32 module semantics (bf16 MXU feed).
        assert jnp.allclose(out, ref_f32, atol=1e-1, rtol=5e-2), \
            "mismatch vs f32 reference"

    print("KERNEL_OK")
</pallas_src>

<mosaic_0001>
module attributes {stable_mosaic.version = 11 : i64} {
  func.func @bloom_mlp_kernel(%arg0: i32, %arg1: i32, %arg2: memref<16x128xbf16, #tpu.memory_space<vmem>>, %arg3: memref<128x512xbf16, #tpu.memory_space<vmem>>, %arg4: memref<1x512xbf16, #tpu.memory_space<vmem>>, %arg5: memref<512x128xbf16, #tpu.memory_space<vmem>>, %arg6: memref<16x128xbf16, #tpu.memory_space<vmem>>, %arg7: memref<1x128xbf16, #tpu.memory_space<vmem>>, %arg8: memref<16x128xf32, #tpu.memory_space<vmem>>, %arg9: memref<16x128xf32, #tpu.memory_space<vmem>>) attributes {dimension_semantics = [#tpu.dimension_semantics<parallel>, #tpu.dimension_semantics<arbitrary>], iteration_bounds = array<i64: 2, 1>, scalar_prefetch = 0 : i64, scratch_operands = 1 : i64, tpu.core_type = #tpu.core_type<tc>, window_params = [{transform_indices = @transform_0, window_bounds = array<i64: 16, 128>}, {transform_indices = @transform_1, window_bounds = array<i64: 128, 512>}, {transform_indices = @transform_2, window_bounds = array<i64: 1, 512>}, {transform_indices = @transform_3, window_bounds = array<i64: 512, 128>}, {transform_indices = @transform_4, window_bounds = array<i64: 16, 128>}, {pipeline_mode = #tpu.pipeline_mode<synchronous>, transform_indices = @transform_5, window_bounds = array<i64: 1, 128>}, {transform_indices = @transform_6, window_bounds = array<i64: 16, 128>}]} {
    %c0 = arith.constant 0 : index
    %c0_0 = arith.constant 0 : index
    %0 = vector.load %arg2[%c0, %c0_0] : memref<16x128xbf16, #tpu.memory_space<vmem>>, vector<16x128xbf16>
    %c0_1 = arith.constant 0 : index
    %c0_2 = arith.constant 0 : index
    %1 = vector.load %arg3[%c0_1, %c0_2] : memref<128x512xbf16, #tpu.memory_space<vmem>>, vector<128x512xbf16>
    %cst = arith.constant dense<0.000000e+00> : vector<16x512xf32>
    %2 = tpu.matmul %0, %1, %cst {dimension_numbers = #tpu.dot_dimension_numbers<[1], [0], [0], [1], [0, 0, 1, 1], [], []>} : vector<16x128xbf16>, vector<128x512xbf16>, vector<16x512xf32> -> vector<16x512xf32>
    %c0_3 = arith.constant 0 : index
    %c0_4 = arith.constant 0 : index
    %3 = vector.load %arg4[%c0_3, %c0_4] : memref<1x512xbf16, #tpu.memory_space<vmem>>, vector<1x512xbf16>
    %4 = arith.extf %3 : vector<1x512xbf16> to vector<1x512xf32>
    %5 = vector.broadcast %4 : vector<1x512xf32> to vector<16x512xf32>
    %6 = arith.addf %2, %5 : vector<16x512xf32>
    %cst_5 = arith.constant 5.000000e-01 : f32
    %7 = vector.broadcast %cst_5 : f32 to vector<16x512xf32>
    %8 = arith.mulf %6, %7 : vector<16x512xf32>
    %cst_6 = arith.constant 0.797884583 : f32
    %9 = vector.broadcast %cst_6 : f32 to vector<16x512xf32>
    %10 = arith.mulf %9, %6 : vector<16x512xf32>
    %cst_7 = arith.constant 4.471500e-02 : f32
    %11 = vector.broadcast %cst_7 : f32 to vector<16x512xf32>
    %12 = arith.mulf %11, %6 : vector<16x512xf32>
    %13 = arith.mulf %12, %6 : vector<16x512xf32>
    %cst_8 = arith.constant 1.000000e+00 : f32
    %14 = vector.broadcast %cst_8 : f32 to vector<16x512xf32>
    %15 = arith.addf %14, %13 : vector<16x512xf32>
    %16 = arith.mulf %10, %15 : vector<16x512xf32>
    %17 = math.tanh %16 : vector<16x512xf32>
    %cst_9 = arith.constant 1.000000e+00 : f32
    %18 = vector.broadcast %cst_9 : f32 to vector<16x512xf32>
    %19 = arith.addf %18, %17 : vector<16x512xf32>
    %20 = arith.mulf %8, %19 : vector<16x512xf32>
    %21 = arith.truncf %20 : vector<16x512xf32> to vector<16x512xbf16>
    %c0_10 = arith.constant 0 : index
    %c0_11 = arith.constant 0 : index
    %22 = vector.load %arg5[%c0_10, %c0_11] : memref<512x128xbf16, #tpu.memory_space<vmem>>, vector<512x128xbf16>
    %cst_12 = arith.constant dense<0.000000e+00> : vector<16x128xf32>
    %23 = tpu.matmul %21, %22, %cst_12 {dimension_numbers = #tpu.dot_dimension_numbers<[1], [0], [0], [1], [0, 0, 1, 1], [], []>} : vector<16x512xbf16>, vector<512x128xbf16>, vector<16x128xf32> -> vector<16x128xf32>
    %c0_i32 = arith.constant 0 : i32
    %24 = arith.cmpi eq, %arg1, %c0_i32 : i32
    %25 = arith.extui %24 : i1 to i32
    %c0_i32_13 = arith.constant 0 : i32
    %26 = arith.cmpi ne, %25, %c0_i32_13 : i32
    scf.if %26 {
      %c0_18 = arith.constant 0 : index
      %c0_19 = arith.constant 0 : index
      %33 = vector.load %arg9[%c0_18, %c0_19] : memref<16x128xf32, #tpu.memory_space<vmem>>, vector<16x128xf32>
      tpu.vector_store %arg9[%c0_18, %c0_19], %23 {strides = array<i32>} : memref<16x128xf32, #tpu.memory_space<vmem>>, vector<16x128xf32>,
    } else {
    }
    %c0_i32_14 = arith.constant 0 : i32
    %27 = arith.cmpi sgt, %arg1, %c0_i32_14 : i32
    %28 = arith.extui %27 : i1 to i32
    %c0_i32_15 = arith.constant 0 : i32
    %29 = arith.cmpi ne, %28, %c0_i32_15 : i32
    scf.if %29 {
      %c0_18 = arith.constant 0 : index
      %c0_19 = arith.constant 0 : index
      %33 = vector.load %arg9[%c0_18, %c0_19] : memref<16x128xf32, #tpu.memory_space<vmem>>, vector<16x128xf32>
      %34 = arith.addf %33, %23 : vector<16x128xf32>
      %c0_20 = arith.constant 0 : index
      %c0_21 = arith.constant 0 : index
      %35 = vector.load %arg9[%c0_20, %c0_21] : memref<16x128xf32, #tpu.memory_space<vmem>>, vector<16x128xf32>
      tpu.vector_store %arg9[%c0_20, %c0_21], %34 {strides = array<i32>} : memref<16x128xf32, #tpu.memory_space<vmem>>, vector<16x128xf32>,
    } else {
    }
    %c0_i32_16 = arith.constant 0 : i32
    %30 = arith.cmpi eq, %arg1, %c0_i32_16 : i32
    %31 = arith.extui %30 : i1 to i32
    %c0_i32_17 = arith.constant 0 : i32
    %32 = arith.cmpi ne, %31, %c0_i32_17 : i32
    scf.if %32 {
      %c0_18 = arith.constant 0 : index
      %c0_19 = arith.constant 0 : index
      %33 = vector.load %arg9[%c0_18, %c0_19] : memref<16x128xf32, #tpu.memory_space<vmem>>, vector<16x128xf32>
      %c0_20 = arith.constant 0 : index
      %c0_21 = arith.constant 0 : index
      %34 = vector.load %arg7[%c0_20, %c0_21] : memref<1x128xbf16, #tpu.memory_space<vmem>>, vector<1x128xbf16>
      %35 = arith.extf %34 : vector<1x128xbf16> to vector<1x128xf32>
      %36 = vector.broadcast %35 : vector<1x128xf32> to vector<16x128xf32>
      %37 = arith.addf %33, %36 : vector<16x128xf32>
      %c0_22 = arith.constant 0 : index
      %c0_23 = arith.constant 0 : index
      %38 = vector.load %arg6[%c0_22, %c0_23] : memref<16x128xbf16, #tpu.memory_space<vmem>>, vector<16x128xbf16>
      %39 = arith.extf %38 : vector<16x128xbf16> to vector<16x128xf32>
      %40 = arith.addf %37, %39 : vector<16x128xf32>
      %c0_24 = arith.constant 0 : index
      %c0_25 = arith.constant 0 : index
      %41 = vector.load %arg8[%c0_24, %c0_25] : memref<16x128xf32, #tpu.memory_space<vmem>>, vector<16x128xf32>
      tpu.vector_store %arg8[%c0_24, %c0_25], %40 {strides = array<i32>} : memref<16x128xf32, #tpu.memory_space<vmem>>, vector<16x128xf32>,
    } else {
    }
    return
  }
  func.func @transform_0(%arg0: i32, %arg1: i32) -> (i32, i32) {
    %c0_i32 = arith.constant 0 : i32
    %c0_i32_0 = arith.constant 0 : i32
    return %arg0, %c0_i32 : i32, i32
  }
  func.func @transform_1(%arg0: i32, %arg1: i32) -> (i32, i32) {
    %c0_i32 = arith.constant 0 : i32
    %c0_i32_0 = arith.constant 0 : i32
    return %c0_i32, %arg1 : i32, i32
  }
  func.func @transform_2(%arg0: i32, %arg1: i32) -> (i32, i32) {
    %c0_i32 = arith.constant 0 : i32
    %c0_i32_0 = arith.constant 0 : i32
    return %c0_i32, %arg1 : i32, i32
  }
  func.func @transform_3(%arg0: i32, %arg1: i32) -> (i32, i32) {
    %c0_i32 = arith.constant 0 : i32
    %c0_i32_0 = arith.constant 0 : i32
    return %arg1, %c0_i32 : i32, i32
  }
  func.func @transform_4(%arg0: i32, %arg1: i32) -> (i32, i32) {
    %c0_i32 = arith.constant 0 : i32
    %c0_i32_0 = arith.constant 0 : i32
    return %arg0, %c0_i32 : i32, i32
  }
  func.func @transform_5(%arg0: i32, %arg1: i32) -> (i32, i32) {
    %c0_i32 = arith.constant 0 : i32
    %c0_i32_0 = arith.constant 0 : i32
    %c0_i32_1 = arith.constant 0 : i32
    return %c0_i32, %c0_i32_0 : i32, i32
  }
  func.func @transform_6(%arg0: i32, %arg1: i32) -> (i32, i32) {
    %c0_i32 = arith.constant 0 : i32
    %c0_i32_0 = arith.constant 0 : i32
    return %arg0, %c0_i32 : i32, i32
  }
}

</mosaic_0001>

<bundles_post_ra>
// kernel: bloom_mlp.1
= control target key start
LH: loop header
LB: loop body
LE: loop exit
PB: predicated region body
PF: predicated region fallthrough
CT: control target
= control target key end

     0   :  { %11 = vsyncpa [#allocation4], 0  ;;  %s2000_s0 = inlined_call_operand.vmem [shape: bf16[32,128], index: 0, kind: input, shape index: {}]   ;;  %s2001_s1 = inlined_call_operand.hbm [shape: bf16[128,512], index: 1, kind: input, shape index: {}]   ;;  %s2002_s2 = inlined_call_operand.vmem [shape: bf16[1,512], index: 2, kind: input, shape index: {}]   ;;  %s2003_s3 = inlined_call_operand.hbm [shape: bf16[512,128], index: 3, kind: input, shape index: {}]   ;;  %s2004_s4 = inlined_call_operand.vmem [shape: bf16[32,128], index: 4, kind: input, shape index: {}]   ;;  %s2005_s5 = inlined_call_operand.vmem [shape: bf16[1,128], index: 5, kind: input, shape index: {}]   ;;  %s2006_s6 = inlined_call_operand.hbm [shape: f32[32,128], index: 6, kind: output, shape index: {}]  }
   0x1   :  { %12 = vsyncpa [#allocation7], 0 }
   0x2   :  { %13 = vsyncpa [#allocation5], 0 }
   0x3   :  { %15 = vsyncpa [#allocation5 + $0x1], 0  ;;  %s1826_s21 = smov 0   ;;  %s1828_s22 = smov 0  }
   0x4   :  { %s1830_s23 = smov 0   ;;  %s1832_s24 = smov 0  }
   0x5   :  { %s1834_s25 = smov 0   ;;  %s1836_s26 = smov 0  }
   0x6 LB: > { %s1187_s27 = sadd.s32 4294967295, %s1781_s26   ;;  %s1188_s28 = sadd.s32 4294967294, %s1781_s26   ;;  %s1781_s26 = sphi %s1836_s26, %s21_s26   ;;  %s1777_s25 = sphi %s1834_s25, %s2016_s25   ;;  %s1773_s24 = sphi %s1832_s24, %s2015_s24   ;;  %s1769_s23 = sphi %s1830_s23, %s2014_s23   ;;  %s1765_s22 = sphi %s1828_s22, %s2013_s22   ;;  %s1761_s21 = sphi %s1826_s21, %s2012_s21  }
   0x7   : > { %s33_s29 = sadd.s32 1, %s1777_s25  ;;  %s191_s30 = sadd.s32 1, %s1769_s23 }
   0x8   : > { %p35_p0 = scmp.ge.s32.totalorder %s33_s29, 2  ;;  %p201_p1 = scmp.ne.s32.totalorder %s1769_s23, %s1765_s22 }
   0x9   : > { %p202_p2 = scmp.eq.s32.totalorder %s1187_s27, 1  ;;  %p207_p3 = scmp.ne.s32.totalorder %s1765_s22, %s1761_s21 }
   0xa   : > { %s2018_s29 = smov (%p35_p0, %s33_s29), 0  ;;  %p208_p5 = scmp.eq.s32.totalorder %s1188_s28, 1 }
   0xb   : > { %p1866_p4 = por %p202_p2, %p201_p1  ;;  %s188_s8 = ssub.s32 %s1777_s25, %s2018_s29 }
   0xc   : > { %p1189_p6 = scmp.ge.s32.totalorder %s1781_s26, 1  ;;  %p189_p7 = scmp.eq.s32.totalorder %s188_s8, 0 }
   0xd   : > { %p1873_p8 = por %p208_p5, %p207_p3  ;;  %p215_p9 = scmp.lt.s32.totalorder %s1781_s26, 3 }
   0xe   : > { %s1879_s10 = scalar_select %p189_p7, %s1769_s23, %s191_s30  }
   0xf   : > { %p1881_p10 = pnand %p1189_p6, %p215_p9  ;;  %p1885_p11 = scmp.eq.s32.totalorder %s1187_s27, 0 }
  0x10   : > { %s229_s15 = sshll.u32 %s2001_s1, 4  ;;  %s1783_s16 = smov [#allocation3]   ;;  %s230_s15 = int_to_ptr.hbm [resolvable:$true] %s229_s15 }
  0x11   : > { %p1547_p12 = pneg %p1881_p10  ;;  %s231_s17 = sshll.u32 %s1783_s16, 4  ;;  %s232_s17 = int_to_ptr.vmem [resolvable:$true] %s231_s17 }
  0x12   : > { %s254_s20 = sshll.u32 %s2003_s3, 4  ;;  %s1784_s27 = smov 256   ;;  %s255_s20 = int_to_ptr.hbm [resolvable:$true] %s254_s20 }
  0x13   : > { %p1548_p13 = pnand %p1885_p11, %p1547_p12  ;;  %s1785_s28 = smov 16  }
  0x14   : > { %s1786_s30 = smov [#allocation6]   ;;  %s1787_s13 = smov 64  }
  0x15   : > { %1550 = dma.hbm_to_vmem [thread:$0]  (!%p1548_p13), %s230_s15, 4096, %s232_s17, [#allocation4], %s1784_s27, %s1784_s27, %s1785_s28  }
  0x16   : > { %s256_s8 = sshll.u32 %s1786_s30, 4  ;;  %s1788_s14 = smov 4   ;;  %s257_s8 = int_to_ptr.vmem [resolvable:$true] %s256_s8 }
  0x17   : > { %1553 = dma.hbm_to_vmem [thread:$0]  (!%p1548_p13), %s255_s20, 4096, %s257_s8, [#allocation7], %s1787_s13, %s1787_s13, %s1788_s14  }
  0x18   : > { %293 = sbr.rel (%p1881_p10) target bundleno = 383 (0x17f), region = 44 }
  0x1d   : > { %1748 = dma.done.wait (%p1885_p11), [#allocation4], 4096  }
  0x1e   : > { %1750 = vsyncadd (%p1885_p11), [#allocation4], 4294963200 }
  0x1f   : > { %1752 = dma.done.wait (%p1885_p11), [#allocation7], 4096  }
  0x20   : > { %1754 = vsyncadd (%p1885_p11), [#allocation7], 4294963200  ;;  %v1320_v0 = vld [vmem:[#allocation3 + $0xe0] sm:$0xf]  ;;  %v1498_v1 = vld [vmem:[#allocation3 + $0xec] sm:$0xf0] }
  0x21   : > { %v1496_v2 = vld [vmem:[#allocation3 + $0xe4] sm:$0xf]  ;;  %v1321_v3 = vor.u32 %v1498_v1, %v1320_v0  ;;  %v1322_v4 = vld [vmem:[#allocation3 + $0xf0] sm:$0xf0]  ;;  %v1328_v5 = vld [vmem:[#allocation3 + $0xe8] sm:$0xf] }
  0x22   : > { %v1499_v6 = vld [vmem:[#allocation3 + $0xf4] sm:$0xf0]  ;;  %v1325_v7 = vor.u32 %v1496_v2, %v1322_v4  ;;  %v1497_v9 = vld [vmem:[#allocation3 + $0xec] sm:$0xf]  ;;  %v1330_v10 = vld [vmem:[#allocation3 + $0xf8] sm:$0xf0] }
  0x23   : > { %v1329_v8 = vor.u32 %v1499_v6, %v1328_v5  ;;  %v1304_v11 = vld [vmem:[#allocation3 + $0xc0] sm:$0xf]  ;;  %573 = vmatpush.bf16.msra.mxu0 %v1321_v3  ;;  %v1333_v12 = vor.u32 %v1497_v9, %v1330_v10  ;;  %v1494_v13 = vld [vmem:[#allocation3 + $0xcc] sm:$0xf0]  ;;  %v1492_v14 = vld [vmem:[#allocation3 + $0xc4] sm:$0xf] }
  0x24   : > { %v1306_v15 = vld [vmem:[#allocation3 + $0xd0] sm:$0xf0]  ;;  %587 = vmatpush.bf16.msra.mxu1 %v1325_v7  ;;  %v1305_v16 = vor.u32 %v1494_v13, %v1304_v11  ;;  %v1312_v18 = vld [vmem:[#allocation3 + $0xc8] sm:$0xf]  ;;  %v1495_v19 = vld [vmem:[#allocation3 + $0xd4] sm:$0xf0] }
  0x25   : > { %601 = vmatpush.bf16.msra.mxu2 %v1329_v8  ;;  %v1309_v17 = vor.u32 %v1492_v14, %v1306_v15  ;;  %v1493_v20 = vld [vmem:[#allocation3 + $0xcc] sm:$0xf]  ;;  %615 = vmatpush.bf16.msra.mxu3 %v1333_v12  ;;  %v1313_v21 = vor.u32 %v1495_v19, %v1312_v18  ;;  %v1314_v22 = vld [vmem:[#allocation3 + $0xd8] sm:$0xf0]  ;;  %v1288_v23 = vld [vmem:[#allocation3 + $0xa0] sm:$0xf] }
  0x26   : > { %v1490_v24 = vld [vmem:[#allocation3 + $0xac] sm:$0xf0]  ;;  %v1317_v25 = vor.u32 %v1493_v20, %v1314_v22  ;;  %v1488_v26 = vld [vmem:[#allocation3 + $0xa4] sm:$0xf]  ;;  %v1290_v27 = vld [vmem:[#allocation3 + $0xb0] sm:$0xf0] }
  0x27   : > { %v1296_v28 = vld [vmem:[#allocation3 + $0xa8] sm:$0xf]  ;;  %574 = vmatpush.bf16.msra.mxu0 %v1305_v16  ;;  %v1289_v29 = vor.u32 %v1490_v24, %v1288_v23  ;;  %v1491_v30 = vld [vmem:[#allocation3 + $0xb4] sm:$0xf0]  ;;  %v1489_v31 = vld [vmem:[#allocation3 + $0xac] sm:$0xf]  ;;  %v1293_v33 = vor.u32 %v1488_v26, %v1290_v27 }
  0x28   : > { %v1298_v32 = vld [vmem:[#allocation3 + $0xb8] sm:$0xf0]  ;;  %588 = vmatpush.bf16.msra.mxu1 %v1309_v17  ;;  %v1297_v34 = vor.u32 %v1491_v30, %v1296_v28  ;;  %v1272_v35 = vld [vmem:[#allocation3 + $0x80] sm:$0xf]  ;;  %v1486_v36 = vld [vmem:[#allocation3 + $0x8c] sm:$0xf0] }
  0x29   : > { %602 = vmatpush.bf16.msra.mxu2 %v1313_v21  ;;  %v1484_v37 = vld [vmem:[#allocation3 + $0x84] sm:$0xf]  ;;  %616 = vmatpush.bf16.msra.mxu3 %v1317_v25  ;;  %v1301_v38 = vor.u32 %v1489_v31, %v1298_v32  ;;  %v1274_v39 = vld [vmem:[#allocation3 + $0x90] sm:$0xf0]  ;;  %v1280_v40 = vld [vmem:[#allocation3 + $0x88] sm:$0xf]  ;;  %v1273_v44 = vor.u32 %v1486_v36, %v1272_v35 }
  0x2a   : > { %v1487_v41 = vld [vmem:[#allocation3 + $0x94] sm:$0xf0]  ;;  %v1485_v42 = vld [vmem:[#allocation3 + $0x8c] sm:$0xf]  ;;  %v1282_v43 = vld [vmem:[#allocation3 + $0x98] sm:$0xf0]  ;;  %v1277_v45 = vor.u32 %v1484_v37, %v1274_v39 }
  0x2b   : > { %575 = vmatpush.bf16.msra.mxu0 %v1289_v29  ;;  %s1198_s11 = sshll.u32 %s1773_s24, 1  ;;  %v1281_v46 = vor.u32 %v1487_v41, %v1280_v40  ;;  %v1256_v47 = vld [vmem:[#allocation3 + $0x60] sm:$0xf]  ;;  %v1482_v48 = vld [vmem:[#allocation3 + $0x6c] sm:$0xf0]  ;;  %v1285_v50 = vor.u32 %v1485_v42, %v1282_v43  ;;  %v1523_v37 = vld [vmem:[#allocation6 + $0xb8] sm:$0xff] }
  0x2c   : > { %589 = vmatpush.bf16.msra.mxu1 %v1293_v33  ;;  %v1480_v49 = vld [vmem:[#allocation3 + $0x64] sm:$0xf]  ;;  %v1258_v51 = vld [vmem:[#allocation3 + $0x70] sm:$0xf0]  ;;  %v1264_v52 = vld [vmem:[#allocation3 + $0x68] sm:$0xf]  ;;  %v1257_v56 = vor.u32 %v1482_v48, %v1256_v47 }
  0x2d   : > { %603 = vmatpush.bf16.msra.mxu2 %v1297_v34  ;;  %617 = vmatpush.bf16.msra.mxu3 %v1301_v38  ;;  %v1483_v53 = vld [vmem:[#allocation3 + $0x74] sm:$0xf0]  ;;  %v1481_v54 = vld [vmem:[#allocation3 + $0x6c] sm:$0xf]  ;;  %v1266_v55 = vld [vmem:[#allocation3 + $0x78] sm:$0xf0]  ;;  %v1261_v57 = vor.u32 %v1480_v49, %v1258_v51 }
  0x2e   : > { %p1912_p0 = scmp.lt.s32.totalorder %s1198_s11, 3  ;;  %v1265_v58 = vor.u32 %v1483_v53, %v1264_v52  ;;  %v1240_v59 = vld [vmem:[#allocation3 + $0x40] sm:$0xf]  ;;  %v1478_v60 = vld [vmem:[#allocation3 + $0x4c] sm:$0xf0]  ;;  %v1269_v62 = vor.u32 %v1481_v54, %v1266_v55  ;;  %v1507_v33 = vld [vmem:[#allocation6 + $0x38] sm:$0xff] }
  0x2f   : > { %576 = vmatpush.bf16.msra.mxu0 %v1273_v44  ;;  %v1476_v61 = vld [vmem:[#allocation3 + $0x44] sm:$0xf]  ;;  %v1242_v63 = vld [vmem:[#allocation3 + $0x50] sm:$0xf0]  ;;  %v1248_v0 = vld [vmem:[#allocation3 + $0x48] sm:$0xf]  ;;  %v1241_v4 = vor.u32 %v1478_v60, %v1240_v59 }
  0x30   : > { %590 = vmatpush.bf16.msra.mxu1 %v1277_v45  ;;  %v1479_v1 = vld [vmem:[#allocation3 + $0x54] sm:$0xf0]  ;;  %v1477_v2 = vld [vmem:[#allocation3 + $0x4c] sm:$0xf]  ;;  %v1250_v3 = vld [vmem:[#allocation3 + $0x58] sm:$0xf0]  ;;  %v1245_v5 = vor.u32 %v1476_v61, %v1242_v63 }
  0x31   : > { %604 = vmatpush.bf16.msra.mxu2 %v1281_v46  ;;  %618 = vmatpush.bf16.msra.mxu3 %v1285_v50  ;;  %s2020_s11 = smov (!%p1912_p0, %s1198_s11), 3  ;;  %v1249_v6 = vor.u32 %v1479_v1, %v1248_v0  ;;  %v1224_v7 = vld [vmem:[#allocation3 + $0x20] sm:$0xf]  ;;  %v1474_v8 = vld [vmem:[#allocation3 + $0x2c] sm:$0xf0]  ;;  %v1253_v10 = vor.u32 %v1477_v2, %v1250_v3  ;;  %v1515_v34 = vld [vmem:[#allocation6 + $0x78] sm:$0xff] }
  0x32   : > { %v1472_v9 = vld [vmem:[#allocation3 + $0x24] sm:$0xf]  ;;  %v1226_v11 = vld [vmem:[#allocation3 + $0x30] sm:$0xf0]  ;;  %v1232_v12 = vld [vmem:[#allocation3 + $0x28] sm:$0xf]  ;;  %v1225_v16 = vor.u32 %v1474_v8, %v1224_v7 }
  0x33   : > { %577 = vmatpush.bf16.msra.mxu0 %v1257_v56  ;;  %v1475_v13 = vld [vmem:[#allocation3 + $0x34] sm:$0xf0]  ;;  %v1473_v14 = vld [vmem:[#allocation3 + $0x2c] sm:$0xf]  ;;  %v1234_v15 = vld [vmem:[#allocation3 + $0x38] sm:$0xf0]  ;;  %v1229_v17 = vor.u32 %v1472_v9, %v1226_v11 }
  0x34   : > { %591 = vmatpush.bf16.msra.mxu1 %v1261_v57  ;;  %s1199_s15 = sshll.u32 %s2020_s11, 2  ;;  %v1233_v18 = vor.u32 %v1475_v13, %v1232_v12  ;;  %v1208_v19 = vld [vmem:[#allocation3] sm:$0xf]  ;;  %v1470_v20 = vld [vmem:[#allocation3 + $0xc] sm:$0xf0]  ;;  %v1237_v22 = vor.u32 %v1473_v14, %v1234_v15  ;;  %v1531_v38 = vld [vmem:[#allocation6 + $0xf8] sm:$0xff] }
  0x35   : > { %605 = vmatpush.bf16.msra.mxu2 %v1265_v58  ;;  %619 = vmatpush.bf16.msra.mxu3 %v1269_v62  ;;  %v1468_v21 = vld [vmem:[#allocation3 + $0x4] sm:$0xf]  ;;  %v1210_v23 = vld [vmem:[#allocation3 + $0x10] sm:$0xf0]  ;;  %v1216_v24 = vld [vmem:[#allocation3 + $0x8] sm:$0xf]  ;;  %v1209_v28 = vor.u32 %v1470_v20, %v1208_v19  ;;  %s342_s18 = scalar_lea.vmem %s2000_s0, %s1199_s15  ;;  %s355_s13 = scalar_lea.vmem %s2004_s4, %s1199_s15 }
  0x36   : > { %v1471_v25 = vld [vmem:[#allocation3 + $0x14] sm:$0xf0]  ;;  %v1469_v26 = vld [vmem:[#allocation3 + $0xc] sm:$0xf]  ;;  %v1218_v27 = vld [vmem:[#allocation3 + $0x18] sm:$0xf0]  ;;  %v1213_v29 = vor.u32 %v1468_v21, %v1210_v23 }
  0x37   : > { %578 = vmatpush.bf16.msra.mxu0 %v1241_v4  ;;  %v1217_v30 = vor.u32 %v1471_v25, %v1216_v24  ;;  %v1221_v31 = vor.u32 %v1469_v26, %v1218_v27  ;;  %v1467_v32 = vld [vmem:[%s342_s18] sm:$0xff]  ;;  %v1506_v35 = vld [vmem:[#allocation6 + $0x30] sm:$0xff]  ;;  %v1505_v39 = vld [vmem:[#allocation6 + $0x28] sm:$0xff]  ;;  %s335_s14 = sand.u32 1, %s1765_s22   ;;  %s1532_s11 = sshll.u32 %s1773_s24, 4 }
  0x38   : > { %592 = vmatpush.bf16.msra.mxu1 %v1245_v5  ;;  %v1514_v36 = vld [vmem:[#allocation6 + $0x70] sm:$0xff]  ;;  %v1513_v40 = vld [vmem:[#allocation6 + $0x68] sm:$0xff]  ;;  %v1504_v43 = vld [vmem:[#allocation6 + $0x20] sm:$0xff]  ;;  %s1197_s12 = sshll.u32 %s335_s14, 4  ;;  %s1063_s18 = scalar_lea.hbm %s2006_s6, %s1532_s11 }
  0x39   : > { %606 = vmatpush.bf16.msra.mxu2 %v1249_v6  ;;  %620 = vmatpush.bf16.msra.mxu3 %v1253_v10  ;;  %v1522_v41 = vld [vmem:[#allocation6 + $0xb0] sm:$0xff]  ;;  %v1512_v44 = vld [vmem:[#allocation6 + $0x60] sm:$0xff]  ;;  %v1521_v45 = vld [vmem:[#allocation6 + $0xa8] sm:$0xff]  ;;  %s337_s16 = scalar_lea.vmem [#allocation8], %s1197_s12  ;;  %s1066_s20 = sshll.u32 %s1063_s18, 4  ;;  %s1067_s20 = int_to_ptr.hbm [resolvable:$true] %s1066_s20 }
  0x3a   : > { %v1530_v42 = vld [vmem:[#allocation6 + $0xf0] sm:$0xff]  ;;  %v1529_v46 = vld [vmem:[#allocation6 + $0xe8] sm:$0xff]  ;;  %v1503_v47 = vld [vmem:[#allocation6 + $0x18] sm:$0xff]  ;;  %s1064_s19 = sshll.u32 %s337_s16, 4  ;;  %s1052_s24 = scalar_lea.sflag [#allocation5], %s335_s14  ;;  %s1065_s19 = int_to_ptr.vmem [resolvable:$true] %s1064_s19 }
  0x3b   : > { %579 = vmatpush.bf16.msra.mxu0 %v1225_v16  ;;  %v1511_v48 = vld [vmem:[#allocation6 + $0x58] sm:$0xff]  ;;  %v392_v49 = vld [vmem:[%s2002_s2] sm:$0xf]  ;;  %v1502_v53 = vld [vmem:[#allocation6 + $0x10] sm:$0xff]  ;;  %s1709_s27 = sshra.s32 %s1067_s20, 4  ;;  %s1710_s27 = int_to_ptr.hbm [resolvable:$true] %s1709_s27 }
  0x3c   : > { %593 = vmatpush.bf16.msra.mxu1 %v1229_v17  ;;  %v1520_v50 = vld [vmem:[#allocation6 + $0xa0] sm:$0xff]  ;;  %v393_v52 = vunpack.c.l.bf16 %v392_v49  ;;  %v1510_v54 = vld [vmem:[#allocation6 + $0x50] sm:$0xff]  ;;  %v1519_v55 = vld [vmem:[#allocation6 + $0x98] sm:$0xff]  ;;  %s1711_s28 = scalar_lea.hbm %s1710_s27, 16  ;;  %p1716_p5 = scmp.lt.s32.totalorder %s1710_s27, %s2006_s6 }
  0x3d   : > { %607 = vmatpush.bf16.msra.mxu2 %v1233_v18  ;;  %621 = vmatpush.bf16.msra.mxu3 %v1237_v22  ;;  %v1528_v51 = vld [vmem:[#allocation6 + $0xe0] sm:$0xff]  ;;  %v1527_v56 = vld [vmem:[#allocation6 + $0xd8] sm:$0xff]  ;;  %v1501_v57 = vld [vmem:[#allocation6 + $0x8] sm:$0xff]  ;;  %p1712_p1 = scmp.ne.s32.totalorder %s1710_s27, %s1711_s28 }
  0x3e   : > { %v1509_v58 = vld [vmem:[#allocation6 + $0x48] sm:$0xff]  ;;  %v395_v59 = vperm.slane %v393_v52, 0  ;;  %v1518_v60 = vld [vmem:[#allocation6 + $0x90] sm:$0xff]  ;;  %v396_v62 = vperm.slane %v393_v52, 2  ;;  %v1500_v63 = vld [vmem:[#allocation6] sm:$0xff]  ;;  %v397_v6 = vperm.slane %v393_v52, 4 }
  0x3f   : > { %580 = vmatpush.bf16.msra.mxu0 %v1209_v28  ;;  %v1526_v61 = vld [vmem:[#allocation6 + $0xd0] sm:$0xff]  ;;  %v1508_v0 = vld [vmem:[#allocation6 + $0x40] sm:$0xff]  ;;  %v1517_v2 = vld [vmem:[#allocation6 + $0x88] sm:$0xff]  ;;  %v398_v9 = vperm.slane %v393_v52, 6  ;;  %p1713_p2 = pnand %p1712_p1, %p1866_p4 }
  0x40   : > { %594 = vmatpush.bf16.msra.mxu1 %v1213_v29  ;;  %v403_v1 = vperm.slane %v395_v59, 0  ;;  %v1525_v3 = vld [vmem:[#allocation6 + $0xc8] sm:$0xff]  ;;  %v404_v4 = vperm.slane %v396_v62, 0  ;;  %v1516_v11 = vld [vmem:[#allocation6 + $0x80] sm:$0xff]  ;;  %v405_v15 = vperm.slane %v397_v6, 0 }
  0x41   : > { %608 = vmatpush.bf16.msra.mxu2 %v1217_v30  ;;  %622 = vmatpush.bf16.msra.mxu3 %v1221_v31  ;;  %v1524_v12 = vld [vmem:[#allocation6 + $0xc0] sm:$0xff]  ;;  %v406_v17 = vperm.slane %v398_v9, 0  ;;  %p1714_p3 = pneg %p1713_p2 }
  0x42   : > { %581 = vmatmul.bf16.vlgmr.msra.gmra.mxu0 %v1467_v32 }
  0x43   : > { %595 = vmatmul.bf16.vlgmr.msra.gmra.mxu1 %v1467_v32  ;;  %961 = vmatpush.bf16.msrb.mxu0 %v1507_v33 }
  0x44   : > { %609 = vmatmul.bf16.vlgmr.msra.gmra.mxu2 %v1467_v32  ;;  %623 = vmatmul.bf16.vlgmr.msra.gmra.mxu3 %v1467_v32 }
  0x45   : > { %975 = vmatpush.bf16.msrb.mxu1 %v1515_v34  ;;  %989 = vmatpush.bf16.msrb.mxu2 %v1523_v37 }
  0x46   : > { %1003 = vmatpush.bf16.msrb.mxu3 %v1531_v38 }
  0x47   : > { %962 = vmatpush.bf16.msrb.mxu0 %v1506_v35 }
  0x49   : > { %976 = vmatpush.bf16.msrb.mxu1 %v1514_v36  ;;  %990 = vmatpush.bf16.msrb.mxu2 %v1522_v41 }
  0x4a   : > { %1004 = vmatpush.bf16.msrb.mxu3 %v1530_v42 }
  0x4b   : > { %963 = vmatpush.bf16.msrb.mxu0 %v1505_v39 }
  0x4d   : > { %977 = vmatpush.bf16.msrb.mxu1 %v1513_v40  ;;  %991 = vmatpush.bf16.msrb.mxu2 %v1521_v45 }
  0x4e   : > { %1005 = vmatpush.bf16.msrb.mxu3 %v1529_v46 }
  0x4f   : > { %964 = vmatpush.bf16.msrb.mxu0 %v1504_v43 }
  0x51   : > { %978 = vmatpush.bf16.msrb.mxu1 %v1512_v44  ;;  %992 = vmatpush.bf16.msrb.mxu2 %v1520_v50 }
  0x52   : > { %1006 = vmatpush.bf16.msrb.mxu3 %v1528_v51 }
  0x53   : > { %965 = vmatpush.bf16.msrb.mxu0 %v1503_v47 }
  0x55   : > { %979 = vmatpush.bf16.msrb.mxu1 %v1511_v48  ;;  %993 = vmatpush.bf16.msrb.mxu2 %v1519_v55 }
  0x56   : > { %1007 = vmatpush.bf16.msrb.mxu3 %v1527_v56 }
  0x57   : > { %966 = vmatpush.bf16.msrb.mxu0 %v1502_v53 }
  0x59   : > { %980 = vmatpush.bf16.msrb.mxu1 %v1510_v54  ;;  %994 = vmatpush.bf16.msrb.mxu2 %v1518_v60 }
  0x5a   : > { %1008 = vmatpush.bf16.msrb.mxu3 %v1526_v61 }
  0x5b   : > { %967 = vmatpush.bf16.msrb.mxu0 %v1501_v57 }
  0x5d   : > { %981 = vmatpush.bf16.msrb.mxu1 %v1509_v58  ;;  %995 = vmatpush.bf16.msrb.mxu2 %v1517_v2 }
  0x5e   : > { %1009 = vmatpush.bf16.msrb.mxu3 %v1525_v3 }
  0x5f   : > { %968 = vmatpush.bf16.msrb.mxu0 %v1500_v63 }
  0x61   : > { %982 = vmatpush.bf16.msrb.mxu1 %v1508_v0  ;;  %996 = vmatpush.bf16.msrb.mxu2 %v1516_v11 }
  0x62   : > { %1010 = vmatpush.bf16.msrb.mxu3 %v1524_v12 }
  0xbf   : > { %v582_v5 = vpop.f32.mrf.mxu0 }
  0xc0   : > { %v1931_v7 = vadd.f32 %v582_v5, %v403_v1  ;;  %v596_v8 = vpop.f32.mrf.mxu1 }
  0xc1   : > { %v1933_v10 = vadd.f32 %v596_v8, %v404_v4 }
  0xc2   : > { %v645_v13 = vmul.f32 0.044715, %v1931_v7  ;;  %v637_v20 = vmul.f32 0.7978846, %v1931_v7  ;;  %v629_v11 = vmul.f32 0.5, %v1931_v7 }
  0xc3   : > { %v646_v14 = vmul.f32 0.044715, %v1933_v10  ;;  %v638_v25 = vmul.f32 0.7978846, %v1933_v10 }
  0xc4   : > { %v653_v16 = vmul.f32 %v645_v13, %v1931_v7 }
  0xc5   : > { %v654_v18 = vmul.f32 %v646_v14, %v1933_v10 }
  0xc6   : > { %v661_v21 = vadd.f32 1.0, %v653_v16 }
  0xc7   : > { %v610_v19 = vpop.f32.mrf.mxu2  ;;  %v624_v23 = vpop.f32.mrf.mxu3  ;;  %v662_v26 = vadd.f32 1.0, %v654_v18 }
  0xc8   : > { %v1940_v22 = vadd.f32 %v610_v19, %v405_v15  ;;  %v584_v24 = vpop.f32.mrf.mxu0  ;;  %v1943_v27 = vadd.f32 %v624_v23, %v406_v17  ;;  %v598_v29 = vpop.f32.mrf.mxu1  ;;  %v669_v36 = vmul.f32 %v661_v21, %v637_v20 }
  0xc9   : > { %v585_v28 = vadd.f32 %v584_v24, %v403_v1  ;;  %v599_v31 = vadd.f32 %v598_v29, %v404_v4  ;;  %v670_v38 = vmul.f32 %v662_v26, %v638_v25 }
  0xca   : > { %v647_v30 = vmul.f32 0.044715, %v1940_v22  ;;  %v648_v32 = vmul.f32 0.044715, %v1943_v27  ;;  %v639_v42 = vmul.f32 0.7978846, %v1940_v22  ;;  %1619 = vtanh.f32 %v669_v36 }
  0xcb   : > { %v649_v34 = vmul.f32 0.044715, %v585_v28  ;;  %v650_v35 = vmul.f32 0.044715, %v599_v31  ;;  %v641_v44 = vmul.f32 0.7978846, %v585_v28  ;;  %1621 = vtanh.f32 %v670_v38 }
  0xcc   : > { %v655_v33 = vmul.f32 %v647_v30, %v1940_v22  ;;  %v656_v37 = vmul.f32 %v648_v32, %v1943_v27  ;;  %v640_v50 = vmul.f32 0.7978846, %v1943_v27  ;;  %v642_v51 = vmul.f32 0.7978846, %v599_v31 }
  0xcd   : > { %v657_v40 = vmul.f32 %v649_v34, %v585_v28  ;;  %v658_v41 = vmul.f32 %v650_v35, %v599_v31  ;;  %v633_v12 = vmul.f32 0.5, %v585_v28  ;;  %v634_v16 = vmul.f32 0.5, %v599_v31 }
  0xce   : > { %v663_v39 = vadd.f32 1.0, %v655_v33  ;;  %v664_v43 = vadd.f32 1.0, %v656_v37  ;;  %v631_v7 = vmul.f32 0.5, %v1940_v22  ;;  %v1038_v22 = vld [vmem:[%s2005_s5] sm:$0x1] }
  0xcf   : > { %v612_v45 = vpop.f32.mrf.mxu2  ;;  %v665_v46 = vadd.f32 1.0, %v657_v40  ;;  %v666_v47 = vadd.f32 1.0, %v658_v41  ;;  %v626_v49 = vpop.f32.mrf.mxu3 }
  0xd0   : > { %v613_v48 = vadd.f32 %v612_v45, %v405_v15  ;;  %v627_v52 = vadd.f32 %v626_v49, %v406_v17  ;;  %v671_v55 = vmul.f32 %v663_v39, %v639_v42  ;;  %v672_v58 = vmul.f32 %v664_v43, %v640_v50  ;;  %v1620_v61 = vpop.eup %1619  ;;  %v1534_v45 = vld [vmem:[%s355_s13] sm:$0xff]   ;;  %s1715_s13 = scalar_lea.hbm %s2006_s6, 32 }
  0xd1   : > { %v673_v54 = vmul.f32 %v665_v46, %v641_v44  ;;  %v674_v57 = vmul.f32 %v666_v47, %v642_v51  ;;  %v1622_v0 = vpop.eup %1621  ;;  %v685_v4 = vadd.f32 1.0, %v1620_v61  ;;  %v630_v15 = vmul.f32 0.5, %v1933_v10  ;;  %p1717_p6 = scmp.lt.s32.totalorder %s1715_s13, %s1711_s28 }
  0xd2   : > { %v651_v53 = vmul.f32 0.044715, %v613_v48  ;;  %v652_v56 = vmul.f32 0.044715, %v627_v52  ;;  %v643_v62 = vmul.f32 0.7978846, %v613_v48  ;;  %v1535_v50 = vunpack.c.l.bf16 %v1534_v45 }
  0xd3   : > { %1623 = vtanh.f32 %v673_v54  ;;  %v644_v1 = vmul.f32 0.7978846, %v627_v52  ;;  %v686_v8 = vadd.f32 1.0, %v1622_v0  ;;  %v693_v19 = vmul.f32 %v685_v4, %v629_v11  ;;  %p1718_p7 = por %p1717_p6, %p1716_p5 }
  0xd4   : > { %v659_v59 = vmul.f32 %v651_v53, %v613_v48  ;;  %v660_v60 = vmul.f32 %v652_v56, %v627_v52  ;;  %1625 = vtanh.f32 %v674_v57  ;;  %v635_v28 = vmul.f32 0.5, %v613_v48 }
  0xd5   : > { %1627 = vtanh.f32 %v671_v55  ;;  %v694_v21 = vmul.f32 %v686_v8, %v630_v15  ;;  %v632_v10 = vmul.f32 0.5, %v1943_v27  ;;  %v636_v31 = vmul.f32 0.5, %v627_v52  ;;  %p1719_p9 = pnand %p1718_p7, %p1714_p3 }
  0xd6   : > { %v667_v63 = vadd.f32 1.0, %v659_v59  ;;  %v668_v2 = vadd.f32 1.0, %v660_v60  ;;  %1629 = vtanh.f32 %v672_v58  ;;  %v1039_v27 = vunpack.c.l.bf16 %v1038_v22 }
  0xd7   : > { %v1536_v60 = vunpack.c.h.bf16 %v1534_v45 }
  0xd8   : > { %v675_v3 = vmul.f32 %v667_v63, %v643_v62  ;;  %v676_v5 = vmul.f32 %v668_v2, %v644_v1  ;;  %v1040_v48 = vperm.slane %v1039_v27, 0 }
  0xd9   : > { %v1624_v6 = vpop.eup %1623 }
  0xda   : > { %1631 = vtanh.f32 %v675_v3  ;;  %v1626_v9 = vpop.eup %1625  ;;  %v689_v13 = vadd.f32 1.0, %v1624_v6 }
  0xdb   : > { %1633 = vtanh.f32 %v676_v5  ;;  %v1628_v14 = vpop.eup %1627  ;;  %v690_v17 = vadd.f32 1.0, %v1626_v9 }
  0xdc   : > { %v1630_v18 = vpop.eup %1629  ;;  %v697_v20 = vmul.f32 %v689_v13, %v633_v12  ;;  %v687_v25 = vadd.f32 1.0, %v1628_v14 }
  0xdd   : > { %v698_v23 = vmul.f32 %v690_v17, %v634_v16  ;;  %v688_v30 = vadd.f32 1.0, %v1630_v18 }
  0xde   : > { %v701_v24 = vpack.c.bf16 %v697_v20, %v693_v19  ;;  %v695_v35 = vmul.f32 %v687_v25, %v631_v7 }
  0xdf   : > { %v702_v29 = vpack.c.bf16 %v698_v23, %v694_v21  ;;  %v696_v37 = vmul.f32 %v688_v30, %v632_v10 }
  0xe0   : > { %v1632_v26 = vpop.eup %1631  ;;  %969 = vmatmul.bf16.vlgmr.msrb.gmra.mxu0 %v701_v24 }
  0xe1   : > { %v1634_v32 = vpop.eup %1633  ;;  %v691_v33 = vadd.f32 1.0, %v1632_v26  ;;  %983 = vmatmul.bf16.vlgmr.msrb.gmra.mxu1 %v702_v29 }
  0xe2   : > { %v692_v34 = vadd.f32 1.0, %v1634_v32 }
  0xe3   : > { %v699_v36 = vmul.f32 %v691_v33, %v635_v28 }
  0xe4   : > { %v700_v38 = vmul.f32 %v692_v34, %v636_v31 }
  0xe5   : > { %v703_v39 = vpack.c.bf16 %v699_v36, %v695_v35 }
  0xe6   : > { %v704_v40 = vpack.c.bf16 %v700_v38, %v696_v37 }
  0xe7   : > { %997 = vmatmul.bf16.vlgmr.msrb.gmra.mxu2 %v703_v39 }
  0xe8   : > { %1011 = vmatmul.bf16.vlgmr.msrb.gmra.mxu3 %v704_v40 }
 0x15d   : > { %v970_v41 = vpop.f32.mrf.mxu0 }
 0x15e   : > { %v984_v42 = vpop.f32.mrf.mxu1 }
 0x15f   : > { %v985_v43 = vadd.f32 %v984_v42, %v970_v41 }
 0x165   : > { %v972_v51 = vpop.f32.mrf.mxu0 }
 0x166   : > { %v986_v52 = vpop.f32.mrf.mxu1 }
 0x167   : > { %v987_v54 = vadd.f32 %v986_v52, %v972_v51 }
 0x16a   : > { %v998_v44 = vpop.f32.mrf.mxu2 }
 0x16b   : > { %v999_v46 = vadd.f32 %v998_v44, %v985_v43  ;;  %v1012_v47 = vpop.f32.mrf.mxu3 }
 0x16d   : > { %v1013_v49 = vadd.f32 %v1012_v47, %v999_v46 }
 0x16f   : > { %v1041_v53 = vadd.f32 %v1040_v48, %v1013_v49 }
 0x171   : > { %v1047_v55 = vadd.f32 %v1535_v50, %v1041_v53 }
 0x172   : > { %v1000_v56 = vpop.f32.mrf.mxu2 }
 0x173   : > { %1049 = vst [vmem:[%s337_s16] sm:$0xff] %v1047_v55  ;;  %v1001_v57 = vadd.f32 %v1000_v56, %v987_v54  ;;  %v1014_v58 = vpop.f32.mrf.mxu3 }
 0x175   : > { %v1015_v59 = vadd.f32 %v1014_v58, %v1001_v57 }
 0x177   : > { %v1042_v61 = vadd.f32 %v1040_v48, %v1015_v59 }
 0x179   : > { %v1048_v62 = vadd.f32 %v1536_v60, %v1042_v61 }
 0x17b   : > { %1050 = vst [vmem:[%s337_s16 + $0x8] sm:$0xff] %v1048_v62 }
 0x17c   : > { %1722 = shalt.err (!%p1719_p9)
}
 0x17d   : > { %s1789_s14 = smov 128   ;;  %s1790_s16 = smov 8  }
 0x17e   : > { %1545 = dma.vmem_to_hbm [thread:$0]  (%p1866_p4), %s1065_s19, 256, %s1067_s20, %s1052_s24, %s1789_s14, %s1789_s14, %s1790_s16  }
 0x17f PF: > { %p1562_p10 = scmp.ge.s32.totalorder %s1781_s26, 2  ;;  %s1081_s15 = sand.u32 1, %s1761_s21  }
 0x180   : > { %s1082_s17 = scalar_lea.sflag [#allocation5], %s1081_s15 }
 0x181   : > { %p1555_p11 = pnand %p1562_p10, %p1873_p8 }
 0x183   : > { %p1556_p12 = pneg %p1555_p11 }
 0x185   : > { %1756 = dma.done.wait (%p1556_p12), %s1082_s17, 256  }
 0x186   : > { %1758 = vsyncadd (%p1556_p12), %s1082_s17, 4294967040  ;;  %s21_s26 = sadd.s32 1, %s1781_s26   ;;  %s2012_s21 = smov %s1765_s22 }
 0x187   : > { %p18_p13 = scmp.ge.s32.totalorder %s21_s26, 4   ;;  %s2013_s22 = smov %s1769_s23 }
 0x188   : > { %s2014_s23 = smov %s1879_s10  ;;  %s2015_s24 = smov %s1777_s25 }
 0x189   : > { %s2016_s25 = smov %s2018_s29  ;;  %20 = sbr.rel (!%p18_p13) target bundleno = 6 (0x6), region = 108 }
 0x18e   :  { %1088 = vsyncpa [#allocation4], 1 }
 0x18f   :  { %1090 = vsyncpa [#allocation4 + $0x1], 1 }
 0x190   :  { %1091 = vsyncpa [#allocation7], 1 }
 0x191   :  { %1092 = vsyncpa [#allocation5], 1 }
 0x192   :  { %1094 = vsyncpa [#allocation5 + $0x1], 1 }

</bundles_post_ra>
